<compile_context>
chip_gen: v7x
topology: tpu7x:2x2x1
jax: 0.10.0
libtpu: 0.0.40
codegen_flags: <defaults>
</compile_context>

<pallas_src>
from functools import partial

import numpy as np
import jax
import jax.numpy as jnp
from jax.experimental import pallas as pl
from jax.experimental.pallas import tpu as pltpu


def _round_up(n, m):
    return ((n + m - 1) // m) * m


def _part_shared_loss_kernel(*refs, n_clust, h2, feat, seg_e, seg_f, reg, inv_f, has_xout):
    if has_xout:
        x_ref, xout_t_ref, ca_ref, w_ref, b_ref, loss_ref, idx_ref = refs
    else:
        x_ref, ca_ref, w_ref, b_ref, loss_ref, idx_ref = refs
        xout_t_ref = None

    xb = x_ref[...]                                   # (Nt, F) rows = samples (streamed once)
    nt = xb.shape[0]

    # ONE fused MXU call per tile: all cluster encoder composites, all cluster
    # reconstruction composites and (default path) the x^T identity passthrough,
    # stacked along the P sublane axis; samples land on lanes (column layout).
    y = jnp.einsum('pf,nf->pn', w_ref[...], xb,
                   preferred_element_type=jnp.float32) + b_ref[...]          # (P, Nt)

    off_r = n_clust * seg_e
    off_i = off_r + n_clust * seg_f
    if has_xout:
        xout_cols = xout_t_ref[...]                   # (F, Nt) pre-transposed X_out
    else:
        xout_cols = y[off_i:off_i + feat, :]          # identity rows == x^T (X_out = X)

    total = jnp.zeros((1, nt), jnp.float32)
    best = jnp.full((1, nt), jnp.inf, jnp.float32)
    best_idx = jnp.full((1, nt), -1, jnp.int32)

    for j in range(n_clust):                          # n_clust tiny & static -> unrolled
        e2 = y[j * seg_e:j * seg_e + h2, :]                           # (H2, Nt)
        diff = y[off_r + j * seg_f:off_r + j * seg_f + feat, :] - xout_cols   # (F, Nt)
        mse = jnp.sum(diff * diff, axis=0, keepdims=True) * inv_f     # (1, Nt) lane-dense
        enc = jnp.sum(e2 * e2, axis=0, keepdims=True)                 # ||encoded2||^2
        l = mse + reg * enc                                           # (1, Nt)

        upd = l < best                 # strict '<' matches `if loss_clust > l` (first min wins)
        best_idx = jnp.where(upd, j, best_idx)
        best = jnp.where(upd, l, best)
        total = total + ca_ref[j:j + 1, :] * l        # clust_assign[j][i] * l

    loss_ref[...] = total              # (1, block_n) lane-dense output block
    idx_ref[...] = best_idx


def _fold_affine_packed(params, centers):
    """Fold the purely-affine chain into one packed (P, F) weight + (P, 1) bias column.

    Row blocks of the packed weight (each padded to a multiple of 8 sublanes):
        [A_0^T .. A_{J-1}^T | M_0^T .. M_{J-1}^T | I_F]
    where A_j = Wse @ We_j (encoder composite, center folded into its bias) and
    M_j = A_j @ B_j with B_j = Wd_j @ Wsd (full reconstruction composite, centers and all
    biases folded into its bias so that diff = M_j^T x + rb_j - x_out directly).
    """
    wse, bse, wsd, bsd, we, be, wd, bd = [jnp.asarray(p, jnp.float32) for p in params]
    centers = jnp.asarray(centers, jnp.float32)           # (J, F)
    n_clust, feat = centers.shape
    h2 = we.shape[-1]

    A = jnp.einsum('fh,jhe->jfe', wse, we)                               # (J, F, H2)
    a = jnp.einsum('h,jhe->je', bse[0], we) + be[:, 0, :]                # (J, H2)
    a = a - jnp.einsum('jf,jfe->je', centers, A)                         # fold (x - c_j)
    B = jnp.einsum('jeh,hf->jef', wd, wsd)                               # (J, H2, F)
    d = jnp.einsum('jh,hf->jf', bd[:, 0, :], wsd) + bsd[0][None, :]      # (J, F)
    M = jnp.einsum('jfe,jeg->jfg', A, B)                                 # (J, F, F)
    rb = jnp.einsum('je,jef->jf', a, B) + d + centers                    # fold (x_out - c_j)

    seg_e = _round_up(h2, 8)
    seg_f = _round_up(feat, 8)
    wrows, brows = [], []
    for j in range(n_clust):
        wrows.append(jnp.pad(A[j].T, ((0, seg_e - h2), (0, 0))))         # (seg_e, F)
        brows.append(jnp.pad(a[j], (0, seg_e - h2)))
    for j in range(n_clust):
        wrows.append(jnp.pad(M[j].T, ((0, seg_f - feat), (0, 0))))       # (seg_f, F)
        brows.append(jnp.pad(rb[j], (0, seg_f - feat)))
    wrows.append(jnp.pad(jnp.eye(feat, dtype=jnp.float32),
                         ((0, seg_f - feat), (0, 0))))                   # x^T passthrough
    brows.append(jnp.zeros((seg_f,), jnp.float32))

    w_pack = jnp.concatenate(wrows, axis=0)                              # (P, F)
    bias = jnp.concatenate(brows)[:, None]                               # (P, 1)
    return w_pack, bias, h2, seg_e, seg_f


def part_shared_loss_batched(Xb, centers, clust_assign_b, params, reg,
                             X_out_b=None, block_n=None):
    """Batched PartSharedLoss.forward.

    Xb: (N, F) samples; clust_assign_b: (n_clust, N) with column n the cluster weights for
    sample n (the module's clust_assign[:, i_n]). Returns (losses, idxs), each (N,), equal to
    module.forward(Xb[n], centers, i_n, clust_assign) per sample.
    """
    Xb = jnp.asarray(Xb, jnp.float32)
    ca = jnp.asarray(clust_assign_b, jnp.float32)
    centers = jnp.asarray(centers, jnp.float32)
    n, feat = Xb.shape
    n_clust = centers.shape[0]
    has_xout = X_out_b is not None

    w_pack, bias, h2, seg_e, seg_f = _fold_affine_packed(params, centers)
    p_rows = w_pack.shape[0]

    # Sample tile: up to 2048 lanes per step (amortizes ~0.35 us/step overhead), lane-dim
    # multiple of 128, and >= 2 grid steps for mid/large batches so v7x's two TensorCores
    # both get work (harmless on single-TC v5e/v6e).
    if block_n is None:
        half = -(-n // 2)
        block_n = int(min(2048, max(128, _round_up(half, 128))))
    n_pad = _round_up(n, block_n)
    if n_pad != n:
        Xb = jnp.pad(Xb, ((0, n_pad - n), (0, 0)))
        ca = jnp.pad(ca, ((0, 0), (0, n_pad - n)))

    inputs = [Xb]
    in_specs = [pl.BlockSpec((block_n, feat), lambda i: (i, 0))]          # X streamed once
    if has_xout:
        # Non-default path only: stream X_out pre-transposed so diff stays in column layout.
        Xo = jnp.pad(jnp.asarray(X_out_b, jnp.float32), ((0, n_pad - n), (0, 0))).T
        inputs.append(Xo)
        in_specs.append(pl.BlockSpec((feat, block_n), lambda i: (0, i)))
    inputs += [ca, w_pack, bias]
    in_specs += [
        pl.BlockSpec((n_clust, block_n), lambda i: (0, i)),               # per-sample weights
        pl.BlockSpec((p_rows, feat), lambda i: (0, 0)),                   # packed composite
        pl.BlockSpec((p_rows, 1), lambda i: (0, 0)),                      # packed bias column
    ]

    kernel = partial(_part_shared_loss_kernel,
                     n_clust=n_clust, h2=h2, feat=feat, seg_e=seg_e, seg_f=seg_f,
                     reg=float(reg), inv_f=1.0 / float(feat), has_xout=has_xout)

    loss, idx = pl.pallas_call(
        kernel,
        out_shape=(jax.ShapeDtypeStruct((1, n_pad), jnp.float32),
                   jax.ShapeDtypeStruct((1, n_pad), jnp.int32)),
        grid=(n_pad // block_n,),
        in_specs=in_specs,
        out_specs=(pl.BlockSpec((1, block_n), lambda i: (0, i)),          # lane-dense outputs
                   pl.BlockSpec((1, block_n), lambda i: (0, i))),
        compiler_params=pltpu.CompilerParams(dimension_semantics=("parallel",)),
    )(*inputs)

    return loss[0, :n], idx[0, :n]


def part_shared_loss(X, centers, i, clust_assign, params, reg, X_out=None):
    """Module-equivalent per-sample API: PartSharedLoss.forward(X, centers, i, clust_assign)."""
    X = jnp.asarray(X, jnp.float32).reshape(1, -1)
    Xo = None if X_out is None else jnp.asarray(X_out, jnp.float32).reshape(1, -1)
    ca = jnp.asarray(clust_assign, jnp.float32)[:, i:i + 1]               # (n_clust, 1)
    losses, idxs = part_shared_loss_batched(X, centers, ca, params, reg, Xo)
    return losses[0], idxs[0]


def reference_forward(X, centers, i, clust_assign, params, reg, X_out=None):
    """Pure-numpy reference mirroring the PyTorch forward (layer-by-layer, no folding)."""
    if X_out is None:
        X_out = X
    wse, bse, wsd, bsd, we, be, wd, bd = params
    n_clust = centers.shape[0]
    total = 0.0
    best = np.inf
    best_idx = -1
    for j in range(n_clust):
        x = X - centers[j]
        x_out = X_out - centers[j]
        h1 = x @ wse + bse[0]
        e2 = h1 @ we[j] + be[j, 0]
        r1 = e2 @ wd[j] + bd[j, 0]
        r2 = r1 @ wsd + bsd[0]
        l = float(np.mean((r2 - x_out) ** 2) + reg * np.sum(e2 ** 2))
        if best > l:
            best = l
            best_idx = j
        total += float(clust_assign[j, i]) * l
    return total, best_idx


if __name__ == "__main__":
    # Model config: in_feature=32, embed_l=[16, 8], num_clusters=2; batch of 200 samples
    # (block_n=128 -> 2-step grid, exercising the sample-tile pipeline).
    F_, H1, H2, n_clust, N = 32, 16, 8, 2, 200
    reg = 0.01

    key = jax.random.PRNGKey(0)
    ks = jax.random.split(key, 12)

    X_all = jax.random.normal(ks[0], (N, F_), jnp.float32)
    centers = jax.random.normal(ks[1], (n_clust, F_), jnp.float32)
    clust_assign = jax.nn.softmax(
        jax.random.normal(ks[2], (n_clust, N), jnp.float32), axis=0)
    X_out_alt = jax.random.normal(ks[11], (N, F_), jnp.float32)

    params = (
        jax.random.normal(ks[3], (F_, H1), jnp.float32) * 0.1,            # shared enc W (in, out)
        jax.random.normal(ks[4], (1, H1), jnp.float32) * 0.1,             # shared enc b
        jax.random.normal(ks[5], (H1, F_), jnp.float32) * 0.1,            # shared dec W
        jax.random.normal(ks[6], (1, F_), jnp.float32) * 0.1,             # shared dec b
        jax.random.normal(ks[7], (n_clust, H1, H2), jnp.float32) * 0.1,   # cluster enc W
        jax.random.normal(ks[8], (n_clust, 1, H2), jnp.float32) * 0.1,    # cluster enc b
        jax.random.normal(ks[9], (n_clust, H2, H1), jnp.float32) * 0.1,   # cluster dec W
        jax.random.normal(ks[10], (n_clust, 1, H1), jnp.float32) * 0.1,   # cluster dec b
    )

    np_params = tuple(np.asarray(p) for p in params)
    X_np, c_np, ca_np = np.asarray(X_all), np.asarray(centers), np.asarray(clust_assign)
    Xo_np = np.asarray(X_out_alt)

    # 1) Default path (X_out = X): single launch, X streamed once.
    losses, idxs = part_shared_loss_batched(X_all, centers, clust_assign, params, reg)
    losses, idxs = jax.block_until_ready((losses, idxs))
    for i in range(N):
        ref_loss, ref_idx = reference_forward(X_np[i], c_np, i, ca_np, np_params, reg)
        assert np.allclose(float(losses[i]), ref_loss, rtol=2e-4, atol=1e-4), \
            (i, float(losses[i]), ref_loss)
        assert int(idxs[i]) == ref_idx, (i, int(idxs[i]), ref_idx)

    # 2) Explicit X_out path.
    losses_o, idxs_o = part_shared_loss_batched(
        X_all, centers, clust_assign, params, reg, X_out_b=X_out_alt)
    losses_o, idxs_o = jax.block_until_ready((losses_o, idxs_o))
    for i in range(N):
        ref_loss, ref_idx = reference_forward(
            X_np[i], c_np, i, ca_np, np_params, reg, X_out=Xo_np[i])
        assert np.allclose(float(losses_o[i]), ref_loss, rtol=2e-4, atol=1e-4), \
            (i, float(losses_o[i]), ref_loss)
        assert int(idxs_o[i]) == ref_idx, (i, int(idxs_o[i]), ref_idx)

    # 3) Module-equivalent single-sample API.
    l3, i3 = part_shared_loss(X_all[3], centers, 3, clust_assign, params, reg)
    l3, i3 = jax.block_until_ready((l3, i3))
    ref_l3, ref_i3 = reference_forward(X_np[3], c_np, 3, ca_np, np_params, reg)
    assert np.allclose(float(l3), ref_l3, rtol=2e-4, atol=1e-4), (float(l3), ref_l3)
    assert int(i3) == ref_i3, (int(i3), ref_i3)

    print("KERNEL_OK")
</pallas_src>

<mosaic_0001>
module attributes {stable_mosaic.version = 11 : i64} {
  func.func @_part_shared_loss_kernel(%arg0: i32, %arg1: memref<128x32xf32, #tpu.memory_space<vmem>>, %arg2: memref<2x128xf32, #tpu.memory_space<vmem>>, %arg3: memref<112x32xf32, #tpu.memory_space<vmem>>, %arg4: memref<112x1xf32, #tpu.memory_space<vmem>>, %arg5: memref<1x128xf32, #tpu.memory_space<vmem>>, %arg6: memref<1x128xi32, #tpu.memory_space<vmem>>) attributes {dimension_semantics = [#tpu.dimension_semantics<parallel>], iteration_bounds = array<i64: 2>, scalar_prefetch = 0 : i64, scratch_operands = 0 : i64, tpu.core_type = #tpu.core_type<tc>, window_params = [{transform_indices = @transform_0, window_bounds = array<i64: 128, 32>}, {transform_indices = @transform_1, window_bounds = array<i64: 2, 128>}, {pipeline_mode = #tpu.pipeline_mode<synchronous>, transform_indices = @transform_2, window_bounds = array<i64: 112, 32>}, {pipeline_mode = #tpu.pipeline_mode<synchronous>, transform_indices = @transform_3, window_bounds = array<i64: 112, 1>}, {transform_indices = @transform_4, window_bounds = array<i64: 1, 128>}, {transform_indices = @transform_5, window_bounds = array<i64: 1, 128>}]} {
    %c0 = arith.constant 0 : index
    %c0_0 = arith.constant 0 : index
    %0 = vector.load %arg1[%c0, %c0_0] : memref<128x32xf32, #tpu.memory_space<vmem>>, vector<128x32xf32>
    %c0_1 = arith.constant 0 : index
    %c0_2 = arith.constant 0 : index
    %1 = vector.load %arg3[%c0_1, %c0_2] : memref<112x32xf32, #tpu.memory_space<vmem>>, vector<112x32xf32>
    "tpu.trace_start"() <{level = 10 : i32, message = "pf,nf->pn"}> : () -> ()
    %cst = arith.constant dense<0.000000e+00> : vector<112x128xf32>
    %2 = tpu.matmul %1, %0, %cst {dimension_numbers = #tpu.dot_dimension_numbers<[1], [1], [0], [0], [0, 0, 1, 0], [], []>} : vector<112x32xf32>, vector<128x32xf32>, vector<112x128xf32> -> vector<112x128xf32>
    "tpu.trace_stop"() : () -> ()
    %c0_3 = arith.constant 0 : index
    %c0_4 = arith.constant 0 : index
    %3 = vector.load %arg4[%c0_3, %c0_4] : memref<112x1xf32, #tpu.memory_space<vmem>>, vector<112x1xf32>
    %4 = vector.broadcast %3 : vector<112x1xf32> to vector<112x128xf32>
    %5 = arith.addf %2, %4 : vector<112x128xf32>
    %6 = vector.extract_strided_slice %5 {offsets = [80, 0], sizes = [32, 128], strides = [1, 1]} : vector<112x128xf32> to vector<32x128xf32>
    %cst_5 = arith.constant 0.000000e+00 : f32
    %7 = vector.broadcast %cst_5 : f32 to vector<1x128xf32>
    %cst_6 = arith.constant 0x7F800000 : f32
    %8 = vector.broadcast %cst_6 : f32 to vector<1x128xf32>
    %c-1_i32 = arith.constant -1 : i32
    %9 = vector.broadcast %c-1_i32 : i32 to vector<1x128xi32>
    %10 = vector.extract_strided_slice %5 {offsets = [0, 0], sizes = [8, 128], strides = [1, 1]} : vector<112x128xf32> to vector<8x128xf32>
    %11 = vector.extract_strided_slice %5 {offsets = [16, 0], sizes = [32, 128], strides = [1, 1]} : vector<112x128xf32> to vector<32x128xf32>
    %12 = arith.subf %11, %6 : vector<32x128xf32>
    %13 = arith.mulf %12, %12 : vector<32x128xf32>
    %cst_7 = arith.constant dense<0.000000e+00> : vector<128xf32>
    %14 = vector.multi_reduction <add>, %13, %cst_7 [0] : vector<32x128xf32> to vector<128xf32>
    %15 = vector.shape_cast %14 : vector<128xf32> to vector<1x128xf32>
    %cst_8 = arith.constant 3.125000e-02 : f32
    %16 = vector.broadcast %cst_8 : f32 to vector<1x128xf32>
    %17 = arith.mulf %15, %16 : vector<1x128xf32>
    %18 = arith.mulf %10, %10 : vector<8x128xf32>
    %cst_9 = arith.constant dense<0.000000e+00> : vector<128xf32>
    %19 = vector.multi_reduction <add>, %18, %cst_9 [0] : vector<8x128xf32> to vector<128xf32>
    %20 = vector.shape_cast %19 : vector<128xf32> to vector<1x128xf32>
    %cst_10 = arith.constant 0.00999999977 : f32
    %21 = vector.broadcast %cst_10 : f32 to vector<1x128xf32>
    %22 = arith.mulf %21, %20 : vector<1x128xf32>
    %23 = arith.addf %17, %22 : vector<1x128xf32>
    %24 = arith.cmpf olt, %23, %8 : vector<1x128xf32>
    %c0_i32 = arith.constant 0 : i32
    %25 = vector.broadcast %c0_i32 : i32 to vector<1x128xi32>
    %26 = arith.select %24, %25, %9 : vector<1x128xi1>, vector<1x128xi32>
    %27 = arith.select %24, %23, %8 : vector<1x128xi1>, vector<1x128xf32>
    %c0_11 = arith.constant 0 : index
    %c0_12 = arith.constant 0 : index
    %28 = vector.load %arg2[%c0_11, %c0_12] : memref<2x128xf32, #tpu.memory_space<vmem>>, vector<1x128xf32>
    %29 = arith.mulf %28, %23 : vector<1x128xf32>
    %30 = arith.addf %7, %29 : vector<1x128xf32>
    %31 = vector.extract_strided_slice %5 {offsets = [8, 0], sizes = [8, 128], strides = [1, 1]} : vector<112x128xf32> to vector<8x128xf32>
    %32 = vector.extract_strided_slice %5 {offsets = [48, 0], sizes = [32, 128], strides = [1, 1]} : vector<112x128xf32> to vector<32x128xf32>
    %33 = arith.subf %32, %6 : vector<32x128xf32>
    %34 = arith.mulf %33, %33 : vector<32x128xf32>
    %cst_13 = arith.constant dense<0.000000e+00> : vector<128xf32>
    %35 = vector.multi_reduction <add>, %34, %cst_13 [0] : vector<32x128xf32> to vector<128xf32>
    %36 = vector.shape_cast %35 : vector<128xf32> to vector<1x128xf32>
    %cst_14 = arith.constant 3.125000e-02 : f32
    %37 = vector.broadcast %cst_14 : f32 to vector<1x128xf32>
    %38 = arith.mulf %36, %37 : vector<1x128xf32>
    %39 = arith.mulf %31, %31 : vector<8x128xf32>
    %cst_15 = arith.constant dense<0.000000e+00> : vector<128xf32>
    %40 = vector.multi_reduction <add>, %39, %cst_15 [0] : vector<8x128xf32> to vector<128xf32>
    %41 = vector.shape_cast %40 : vector<128xf32> to vector<1x128xf32>
    %cst_16 = arith.constant 0.00999999977 : f32
    %42 = vector.broadcast %cst_16 : f32 to vector<1x128xf32>
    %43 = arith.mulf %42, %41 : vector<1x128xf32>
    %44 = arith.addf %38, %43 : vector<1x128xf32>
    %45 = arith.cmpf olt, %44, %27 : vector<1x128xf32>
    %c1_i32 = arith.constant 1 : i32
    %46 = vector.broadcast %c1_i32 : i32 to vector<1x128xi32>
    %47 = arith.select %45, %46, %26 : vector<1x128xi1>, vector<1x128xi32>
    %c1 = arith.constant 1 : index
    %c0_17 = arith.constant 0 : index
    %48 = vector.load %arg2[%c1, %c0_17] : memref<2x128xf32, #tpu.memory_space<vmem>>, vector<1x128xf32>
    %49 = arith.mulf %48, %44 : vector<1x128xf32>
    %50 = arith.addf %30, %49 : vector<1x128xf32>
    %c0_18 = arith.constant 0 : index
    %c0_19 = arith.constant 0 : index
    %51 = vector.load %arg5[%c0_18, %c0_19] : memref<1x128xf32, #tpu.memory_space<vmem>>, vector<1x128xf32>
    tpu.vector_store %arg5[%c0_18, %c0_19], %50 {strides = array<i32>} : memref<1x128xf32, #tpu.memory_space<vmem>>, vector<1x128xf32>,
    %c0_20 = arith.constant 0 : index
    %c0_21 = arith.constant 0 : index
    %52 = vector.load %arg6[%c0_20, %c0_21] : memref<1x128xi32, #tpu.memory_space<vmem>>, vector<1x128xi32>
    tpu.vector_store %arg6[%c0_20, %c0_21], %47 {strides = array<i32>} : memref<1x128xi32, #tpu.memory_space<vmem>>, vector<1x128xi32>,
    return
  }
  func.func @transform_0(%arg0: i32) -> (i32, i32) {
    %c0_i32 = arith.constant 0 : i32
    %c0_i32_0 = arith.constant 0 : i32
    return %arg0, %c0_i32 : i32, i32
  }
  func.func @transform_1(%arg0: i32) -> (i32, i32) {
    %c0_i32 = arith.constant 0 : i32
    %c0_i32_0 = arith.constant 0 : i32
    return %c0_i32, %arg0 : i32, i32
  }
  func.func @transform_2(%arg0: i32) -> (i32, i32) {
    %c0_i32 = arith.constant 0 : i32
    %c0_i32_0 = arith.constant 0 : i32
    %c0_i32_1 = arith.constant 0 : i32
    return %c0_i32, %c0_i32_0 : i32, i32
  }
  func.func @transform_3(%arg0: i32) -> (i32, i32) {
    %c0_i32 = arith.constant 0 : i32
    %c0_i32_0 = arith.constant 0 : i32
    %c0_i32_1 = arith.constant 0 : i32
    return %c0_i32, %c0_i32_0 : i32, i32
  }
  func.func @transform_4(%arg0: i32) -> (i32, i32) {
    %c0_i32 = arith.constant 0 : i32
    %c0_i32_0 = arith.constant 0 : i32
    return %c0_i32, %arg0 : i32, i32
  }
  func.func @transform_5(%arg0: i32) -> (i32, i32) {
    %c0_i32 = arith.constant 0 : i32
    %c0_i32_0 = arith.constant 0 : i32
    return %c0_i32, %arg0 : i32, i32
  }
}

</mosaic_0001>

<bundles_post_ra>
// kernel: tpu_custom_call.1
= control target key start
LH: loop header
LB: loop body
LE: loop exit
PB: predicated region body
PF: predicated region fallthrough
CT: control target
= control target key end

     0   :  { %11 = vsyncpa [#allocation3], 0  ;;  %s1482_s0 = inlined_call_operand.vmem [shape: f32[256,32], index: 0, kind: input, shape index: {}]   ;;  %s1483_s1 = inlined_call_operand.vmem [shape: f32[2,256], index: 1, kind: input, shape index: {}]   ;;  %s1484_s2 = inlined_call_operand.vmem [shape: f32[112,32], index: 2, kind: input, shape index: {}]   ;;  %s1485_s3 = inlined_call_operand.vmem [shape: f32[112,1], index: 3, kind: input, shape index: {}]   ;;  %s1486_s4 = inlined_call_operand.hbm [shape: f32[1,256], index: 4, kind: output, shape index: {0}]   ;;  %s1487_s5 = inlined_call_operand.hbm [shape: s32[1,256], index: 5, kind: output, shape index: {1}]  }
   0x1   :  { %13 = vsyncpa [#allocation3 + $0x1], 0 }
   0x2   :  { %14 = vsyncpa [#allocation5], 0 }
   0x3   :  { %16 = vsyncpa [#allocation5 + $0x1], 0  ;;  %s1149_s18 = smov 0   ;;  %s1151_s19 = smov 0  }
   0x4   :  { %s1153_s20 = smov 0   ;;  %s1155_s21 = smov 0  }
   0x5 LB: > { %s1170_s22 = sadd.s32 4294967295, %s1113_s21   ;;  %s783_s23 = sadd.s32 4294967294, %s1113_s21   ;;  %s1113_s21 = sphi %s1155_s21, %s1495_s21   ;;  %s1109_s20 = sphi %s1153_s20, %s1494_s20   ;;  %s1105_s19 = sphi %s1151_s19, %s1493_s19   ;;  %s1101_s18 = sphi %s1149_s18, %s1492_s18  }
   0x6   : > { %s1174_s24 = sadd.s32 1, %s1113_s21   ;;  %s123_s25 = sadd.s32 1, %s1109_s20 }
   0x7   : > { %s120_s26 = ssub.s32 %s1113_s21, %s1174_s24  ;;  %p133_p0 = scmp.ne.s32.totalorder %s1109_s20, %s1105_s19 }
   0x8   : > { %p121_p1 = scmp.eq.s32.totalorder %s120_s26, 0  ;;  %p134_p2 = scmp.eq.s32.totalorder %s1170_s22, 1 }
   0x9   : > { %p139_p3 = scmp.ne.s32.totalorder %s1105_s19, %s1101_s18  ;;  %p140_p4 = scmp.eq.s32.totalorder %s783_s23, 1 }
   0xa   : > { %s1185_s27 = scalar_select %p121_p1, %s1109_s20, %s123_s25  }
   0xb   : > { %p1187_p5 = por %p134_p2, %p133_p0  ;;  %p1191_p6 = por %p140_p4, %p139_p3 }
   0xc   : > { %p786_p7 = scmp.ge.s32.totalorder %s1113_s21, 1  ;;  %p206_p8 = scmp.lt.s32.totalorder %s1113_s21, 3 }
   0xe   : > { %p207_p9 = pnand %p786_p7, %p206_p8 }
   0xf   : > { %s1198_s30 = sshll.u32 (!%p207_p9), %s1170_s22, 4  ;;  %vm365_vm0 = vcmask (!%p207_p9), 261120   ;;  %v267_v0 = vld [vmem:[%s1484_s2] sm:$0xff] (!%p207_p9)  ;;  %v1115_v2 = vmov (!%p207_p9), 0   ;;  %v287_v3 = vld [vmem:[%s1485_s3 + $0x30] sm:$0xff] (!%p207_p9)  ;;  %v288_v12 = vld [vmem:[%s1485_s3 + $0x38] sm:$0xff] (!%p207_p9) }
  0x10   : > { %210 = sbr.rel (%p207_p9) target bundleno = 386 (0x182), region = 36  ;;  %v275_v1 = vld [vmem:[%s1484_s2 + $0x40] sm:$0xff] (!%p207_p9)  ;;  %p242_p10 = scmp.lt.s32.totalorder (!%p207_p9), %s1198_s30, 31  ;;  %886 = vmatprep.mubr.msk.f32.mxu0 (!%p207_p9), %vm365_vm0, %v267_v0  ;;  %1018 = vset.pattern.permute.xlu1 (!%p207_p9), %v1115_v2  ;;  %v283_v4 = vld [vmem:[%s1485_s3 + $0x10] sm:$0xff] (!%p207_p9)  ;;  %vm1223_vm1 = vmpackc.low (!%p207_p9), %vm365_vm0, %vm365_vm0 }
  0x11   : > { %898 = vmatprep.mubr.msk.f32.mxu1 (!%p207_p9), %vm365_vm0, %v275_v1  ;;  %1017 = vset.pattern.permute.xlu0 (!%p207_p9), %v1115_v2  ;;  %v284_v13 = vld [vmem:[%s1485_s3 + $0x18] sm:$0xff] (!%p207_p9)  ;;  %v291_v17 = vld [vmem:[%s1485_s3 + $0x50] sm:$0xff] (!%p207_p9)  ;;  %v289_v19 = vld [vmem:[%s1485_s3 + $0x40] sm:$0xff] (!%p207_p9)  ;;  %p247_p11 = scmp.lt.s32.totalorder (!%p207_p9), %s1170_s22, 1  ;;  %s1394_s8 = sand.u32 (!%p207_p9), 1, %s1105_s19  }
  0x12   : > { %327 = vperm.xlu1 (!%p207_p9), %1018, %v287_v3   ;;  %307 = vperm.xlu0 (!%p207_p9), %1017, %v283_v4   ;;  %v292_v16 = vld [vmem:[%s1485_s3 + $0x58] sm:$0xff] (!%p207_p9)  ;;  %v285_v20 = vld [vmem:[%s1485_s3 + $0x20] sm:$0xff] (!%p207_p9)  ;;  %v286_v23 = vld [vmem:[%s1485_s3 + $0x28] sm:$0xff] (!%p207_p9)  ;;  %s240_s13 = scalar_lea.vmem (!%p207_p9), [#allocation4], %s1394_s8  ;;  %s1407_s17 = scalar_lea.hbm (!%p207_p9), %s1487_s5, %s1198_s30 }
  0x13   : > { %v293_v24 = vld [vmem:[%s1485_s3 + $0x60] sm:$0xff] (!%p207_p9)  ;;  %v294_v26 = vld [vmem:[%s1485_s3 + $0x68] sm:$0xff] (!%p207_p9)  ;;  %v269_v44 = vld [vmem:[%s1484_s2 + $0x10] sm:$0xff] (!%p207_p9)  ;;  %s1415_s6 = scalar_lea.hbm (!%p207_p9), %s1486_s4, %s1198_s30  ;;  %s663_s7 = scalar_lea.sflag (!%p207_p9), [#allocation5], %s1394_s8 }
  0x14   : > { %v290_v27 = vld [vmem:[%s1485_s3 + $0x48] sm:$0xff] (!%p207_p9)  ;;  %v281_v31 = vld [vmem:[%s1485_s3] sm:$0xff] (!%p207_p9)  ;;  %v277_v45 = vld [vmem:[%s1484_s2 + $0x50] sm:$0xff] (!%p207_p9) }
  0x15   : > { %v282_v30 = vld [vmem:[%s1485_s3 + $0x8] sm:$0xff] (!%p207_p9)  ;;  %v270_v46 = vld [vmem:[%s1484_s2 + $0x18] sm:$0xff] (!%p207_p9)  ;;  %v271_v48 = vld [vmem:[%s1484_s2 + $0x20] sm:$0xff] (!%p207_p9) }
  0x16   : > { %332 = vperm.xlu1 (!%p207_p9), %1018, %v288_v12   ;;  %312 = vperm.xlu0 (!%p207_p9), %1017, %v284_v13   ;;  %v268_v42 = vld [vmem:[%s1484_s2 + $0x8] sm:$0xff] (!%p207_p9)  ;;  %v278_v47 = vld [vmem:[%s1484_s2 + $0x58] sm:$0xff] (!%p207_p9)  ;;  %v279_v49 = vld [vmem:[%s1484_s2 + $0x60] sm:$0xff] (!%p207_p9) }
  0x17   : > { %s243_s10 = scalar_select %p242_p10, %s1198_s30, 31  ;;  %v276_v43 = vld [vmem:[%s1484_s2 + $0x48] sm:$0xff]  ;;  %v273_v52 = vld [vmem:[%s1484_s2 + $0x30] sm:$0xff]  ;;  %v274_v53 = vld [vmem:[%s1484_s2 + $0x38] sm:$0xff] }
  0x18   : > { %v272_v50 = vld [vmem:[%s1484_s2 + $0x28] sm:$0xff]  ;;  %s1497_s22 = smov (!%p247_p11, %s1170_s22), 1 }
  0x19   : > { %s788_s11 = sshll.u32 %s243_s10, 3  ;;  %v280_v51 = vld [vmem:[%s1484_s2 + $0x68] sm:$0xff]  ;;  %s789_s9 = sshll.u32 %s1497_s22, 1 }
  0x1a   : > { %s1219_s23 = scalar_lea.vmem %s1482_s0, %s788_s11  ;;  %352 = vperm.xlu1 %1018, %v292_v16   ;;  %347 = vperm.xlu0 %1017, %v291_v17   ;;  %s250_s12 = scalar_lea.vmem %s1483_s1, %s789_s9 }
  0x1b   : > { %v251_v6 = vld [vmem:[%s1219_s23] sm:$0xff]  ;;  %v252_v7 = vld [vmem:[%s1219_s23 + $0x8] sm:$0xff]  ;;  %v253_v8 = vld [vmem:[%s1219_s23 + $0x10] sm:$0xff]  ;;  %s234_s22 = scalar_lea.vmem [#allocation2], %s1394_s8  ;;  %s1117_s10 = smov [#allocation4]  }
  0x1c   : > { %v907_v9 = vpack.c.bf16 %v252_v7, %v251_v6  ;;  %v254_v10 = vld [vmem:[%s1219_s23 + $0x18] sm:$0xff]  ;;  %v255_v14 = vld [vmem:[%s1219_s23 + $0x20] sm:$0xff]  ;;  %v256_v15 = vld [vmem:[%s1219_s23 + $0x28] sm:$0xff]  ;;  %s675_s14 = sshll.u32 %s234_s22, 4  ;;  %s1023_s11 = sshll.u32 %s1117_s10, 4  ;;  %s1417_s14 = int_to_ptr.vmem [resolvable:$true] %s675_s14  ;;  %s1024_s11 = int_to_ptr.vmem [resolvable:$false] %s1023_s11 }
  0x1d   : > { %v913_v11 = vpack.c.bf16 %v254_v10, %v253_v8  ;;  %v919_v18 = vpack.c.bf16 %v256_v15, %v255_v14  ;;  %v257_v21 = vld [vmem:[%s1219_s23 + $0x30] sm:$0xff]  ;;  %v258_v22 = vld [vmem:[%s1219_s23 + $0x38] sm:$0xff]  ;;  %v259_v28 = vld [vmem:[%s1219_s23 + $0x40] sm:$0xff] }
  0x1e   : > { %909 = vmatprep.subr.msk.bf16.mxu0 %vm1223_vm1, %v907_v9  ;;  %955 = vmatprep.subr.msk.bf16.mxu1 %vm1223_vm1, %v907_v9  ;;  %v925_v25 = vpack.c.bf16 %v258_v22, %v257_v21  ;;  %v260_v29 = vld [vmem:[%s1219_s23 + $0x48] sm:$0xff]  ;;  %v261_v33 = vld [vmem:[%s1219_s23 + $0x50] sm:$0xff]  ;;  %v262_v34 = vld [vmem:[%s1219_s23 + $0x58] sm:$0xff] }
  0x1f   : > { %912 = vmatpush3.bf16.xpose.msk.msra.mxu0 %vm1223_vm1, %v907_v9  ;;  %963 = vmatpush3.bf16.xpose.msk.msra.mxu1 %vm1223_vm1, %v907_v9  ;;  %v931_v32 = vpack.c.bf16 %v260_v29, %v259_v28  ;;  %v937_v35 = vpack.c.bf16 %v262_v34, %v261_v33  ;;  %v263_v36 = vld [vmem:[%s1219_s23 + $0x60] sm:$0xff]  ;;  %v264_v37 = vld [vmem:[%s1219_s23 + $0x68] sm:$0xff]  ;;  %v265_v39 = vld [vmem:[%s1219_s23 + $0x70] sm:$0xff] }
  0x20   : > { %915 = vmatprep.subr.msk.bf16.mxu0 %vm1223_vm1, %v913_v11  ;;  %956 = vmatprep.subr.msk.bf16.mxu1 %vm1223_vm1, %v913_v11  ;;  %v943_v38 = vpack.c.bf16 %v264_v37, %v263_v36  ;;  %v266_v40 = vld [vmem:[%s1219_s23 + $0x78] sm:$0xff]  ;;  %s688_s23 = sshll.u32 %s240_s13, 4  ;;  %s1409_s23 = int_to_ptr.vmem [resolvable:$true] %s688_s23 }
  0x21   : > { %337 = vperm.xlu1 %1018, %v289_v19   ;;  %317 = vperm.xlu0 %1017, %v285_v20   ;;  %v949_v41 = vpack.c.bf16 %v266_v40, %v265_v39  ;;  %s1019_s9 = scalar_lea.vmem %s1409_s23, 16  ;;  %p1026_p1 = scmp.lt.s32.totalorder %s1409_s23, %s1024_s11 }
  0x22   : > { %p1020_p12 = scmp.ne.s32.totalorder %s1409_s23, %s1019_s9 }
  0x24   : > { %p1021_p13 = pnand %p1020_p12, %p1187_p5 }
  0x25   : > { %322 = vperm.xlu1 %1018, %v286_v23   ;;  %357 = vperm.xlu0 %1017, %v293_v24  }
  0x26   : > { %p1022_p0 = pneg %p1021_p13 }
  0x27   : > { %918 = vmatpush3.bf16.xpose.msk.msra.mxu0 %vm1223_vm1, %v913_v11  ;;  %964 = vmatpush3.bf16.xpose.msk.msra.mxu1 %vm1223_vm1, %v913_v11 }
  0x28   : > { %921 = vmatprep.subr.msk.bf16.mxu0 %vm1223_vm1, %v919_v18  ;;  %957 = vmatprep.subr.msk.bf16.mxu1 %vm1223_vm1, %v919_v18 }
  0x29   : > { %362 = vperm.xlu1 %1018, %v294_v26   ;;  %342 = vperm.xlu0 %1017, %v290_v27  }
  0x2d   : > { %302 = vperm.xlu1 %1018, %v282_v30   ;;  %297 = vperm.xlu0 %1017, %v281_v31  }
  0x2f   : > { %924 = vmatpush3.bf16.xpose.msk.msra.mxu0 %vm1223_vm1, %v919_v18  ;;  %965 = vmatpush3.bf16.xpose.msk.msra.mxu1 %vm1223_vm1, %v919_v18 }
  0x30   : > { %927 = vmatprep.subr.msk.bf16.mxu0 %vm1223_vm1, %v925_v25  ;;  %958 = vmatprep.subr.msk.bf16.mxu1 %vm1223_vm1, %v925_v25 }
  0x37   : > { %930 = vmatpush3.bf16.xpose.msk.msra.mxu0 %vm1223_vm1, %v925_v25  ;;  %966 = vmatpush3.bf16.xpose.msk.msra.mxu1 %vm1223_vm1, %v925_v25 }
  0x38   : > { %933 = vmatprep.subr.msk.bf16.mxu0 %vm1223_vm1, %v931_v32  ;;  %959 = vmatprep.subr.msk.bf16.mxu1 %vm1223_vm1, %v931_v32 }
  0x3f   : > { %936 = vmatpush3.bf16.xpose.msk.msra.mxu0 %vm1223_vm1, %v931_v32  ;;  %967 = vmatpush3.bf16.xpose.msk.msra.mxu1 %vm1223_vm1, %v931_v32 }
  0x40   : > { %939 = vmatprep.subr.msk.bf16.mxu0 %vm1223_vm1, %v937_v35  ;;  %960 = vmatprep.subr.msk.bf16.mxu1 %vm1223_vm1, %v937_v35 }
  0x47   : > { %942 = vmatpush3.bf16.xpose.msk.msra.mxu0 %vm1223_vm1, %v937_v35  ;;  %968 = vmatpush3.bf16.xpose.msk.msra.mxu1 %vm1223_vm1, %v937_v35 }
  0x48   : > { %945 = vmatprep.subr.msk.bf16.mxu0 %vm1223_vm1, %v943_v38  ;;  %961 = vmatprep.subr.msk.bf16.mxu1 %vm1223_vm1, %v943_v38 }
  0x4f   : > { %948 = vmatpush3.bf16.xpose.msk.msra.mxu0 %vm1223_vm1, %v943_v38  ;;  %969 = vmatpush3.bf16.xpose.msk.msra.mxu1 %vm1223_vm1, %v943_v38 }
  0x50   : > { %951 = vmatprep.subr.msk.bf16.mxu0 %vm1223_vm1, %v949_v41  ;;  %962 = vmatprep.subr.msk.bf16.mxu1 %vm1223_vm1, %v949_v41 }
  0x57   : > { %954 = vmatpush3.bf16.xpose.msk.msra.mxu0 %vm1223_vm1, %v949_v41  ;;  %970 = vmatpush3.bf16.xpose.msk.msra.mxu1 %vm1223_vm1, %v949_v41 }
  0x5e   : > { %887 = vmatmul.mubr.msk.f32.vlgmr.msra.gmra.mrb[0].mxu0 %vm365_vm0, %v268_v42  ;;  %899 = vmatmul.mubr.msk.f32.vlgmr.msra.gmra.mrb[0].mxu1 %vm365_vm0, %v276_v43 }
  0x5f   : > { %889 = vmatprep.mubr.msk.f32.mxu0 %vm365_vm0, %v269_v44  ;;  %901 = vmatprep.mubr.msk.f32.mxu1 %vm365_vm0, %v277_v45 }
  0x62   : > { %890 = vmatmul.mubr.msk.f32.gmra.mrb[2].mxu0 %vm365_vm0, %v270_v46  ;;  %902 = vmatmul.mubr.msk.f32.gmra.mrb[2].mxu1 %vm365_vm0, %v278_v47 }
  0x63   : > { %892 = vmatprep.mubr.msk.f32.mxu0 %vm365_vm0, %v271_v48  ;;  %904 = vmatprep.mubr.msk.f32.mxu1 %vm365_vm0, %v279_v49 }
  0x66   : > { %893 = vmatmul.mubr.msk.f32.gmra.mrb[4].mxu0 %vm365_vm0, %v272_v50  ;;  %905 = vmatmul.mubr.msk.f32.gmra.mrb[4].mxu1 %vm365_vm0, %v280_v51 }
  0x67   : > { %895 = vmatprep.mubr.msk.f32.mxu0 %vm365_vm0, %v273_v52 }
  0x6a   : > { %896 = vmatmul.mubr.msk.f32.gmra.mrb[6].mxu0 %vm365_vm0, %v274_v53 }
  0x91   : > { %v308_v54 = vpop.permute.xlu0 %307  ;;  %v328_v55 = vpop.permute.xlu1 %327 }
  0x95   : > { %v313_v56 = vpop.permute.xlu0 %312  ;;  %v333_v57 = vpop.permute.xlu1 %332 }
  0x99   : > { %v348_v58 = vpop.permute.xlu0 %347  ;;  %v353_v59 = vpop.permute.xlu1 %352 }
  0xa0   : > { %v318_v60 = vpop.permute.xlu0 %317  ;;  %v338_v61 = vpop.permute.xlu1 %337 }
  0xa4   : > { %v358_v62 = vpop.permute.xlu0 %357  ;;  %v323_v63 = vpop.permute.xlu1 %322 }
  0xa8   : > { %v343_v0 = vpop.permute.xlu0 %342  ;;  %v363_v1 = vpop.permute.xlu1 %362 }
  0xac   : > { %v298_v2 = vpop.permute.xlu0 %297  ;;  %v303_v8 = vpop.permute.xlu1 %302 }
 0x131   : > { %v888_v3 = vpop.f32.mrb[0].mxu0  ;;  %v900_v4 = vpop.f32.mrb[0].mxu1 }
 0x132   : > { %v522_v5 = vpop.f32.mrb[1].mxu0  ;;  %v562_v6 = vpop.f32.mrb[1].mxu1  ;;  %v528_v16 = vadd.f32 %v888_v3, %v303_v8  ;;  %v568_v20 = vadd.f32 %v900_v4, %v343_v0 }
 0x133   : > { %v523_v7 = vadd.f32 %v522_v5, %v298_v2  ;;  %v563_v25 = vadd.f32 %v562_v6, %v338_v61 }
 0x134   : > { %v642_v31 = vmul.f32 %v528_v16, %v528_v16 }
 0x135   : > { %v609_v9 = vmul.f32 %v523_v7, %v523_v7  ;;  %v891_v10 = vpop.f32.mrb[2].mxu0  ;;  %v903_v11 = vpop.f32.mrb[2].mxu1 }
 0x136   : > { %v538_v12 = vadd.f32 %v891_v10, %v313_v56  ;;  %v578_v13 = vadd.f32 %v903_v11, %v353_v59  ;;  %v532_v14 = vpop.f32.mrb[3].mxu0  ;;  %v572_v15 = vpop.f32.mrb[3].mxu1  ;;  %v643_v44 = vrot.slane %v642_v31, 4 }
 0x137   : > { %v533_v17 = vadd.f32 %v532_v14, %v308_v54  ;;  %v573_v18 = vadd.f32 %v572_v15, %v348_v58  ;;  %v610_v21 = vrot.slane %v609_v9, 4 }
 0x138   : > { %v592_v19 = vsub.f32 %v538_v12, %v578_v13  ;;  %v644_v53 = vadd.f32 %v643_v44, %v642_v31 }
 0x139   : > { %v591_v22 = vsub.f32 %v533_v17, %v573_v18  ;;  %v894_v23 = vpop.f32.mrb[4].mxu0  ;;  %v906_v24 = vpop.f32.mrb[4].mxu1  ;;  %v611_v37 = vadd.f32 %v610_v21, %v609_v9  ;;  %v621_v21 = vld [vmem:[%s250_s12] sm:$0x1] }
 0x13a   : > { %v596_v26 = vmul.f32 %v592_v19, %v592_v19  ;;  %v548_v27 = vadd.f32 %v894_v23, %v323_v63  ;;  %v588_v28 = vadd.f32 %v906_v24, %v363_v1  ;;  %v542_v29 = vpop.f32.mrb[5].mxu0  ;;  %v582_v30 = vpop.f32.mrb[5].mxu1 }
 0x13b   : > { %v595_v32 = vmul.f32 %v591_v22, %v591_v22  ;;  %v543_v33 = vadd.f32 %v542_v29, %v318_v60  ;;  %v583_v34 = vadd.f32 %v582_v30, %v358_v62  ;;  %v612_v48 = vrot.slane %v611_v37, 2  ;;  %v653_v22 = vld [vmem:[%s250_s12 + $0x1] sm:$0x1]  ;;  %s1025_s12 = scalar_lea.vmem %s1024_s11, 32 }
 0x13c   : > { %v594_v35 = vsub.f32 %v548_v27, %v588_v28  ;;  %v627_v36 = vsub.f32 %v568_v20, %v588_v28  ;;  %v1116_v27 = vmov 4294967295   ;;  %p1027_p2 = scmp.lt.s32.totalorder %s1025_s12, %s1019_s9 }
 0x13d   : > { %v599_v38 = vadd.f32 %v596_v26, %v595_v32  ;;  %v593_v39 = vsub.f32 %v543_v33, %v583_v34  ;;  %v626_v40 = vsub.f32 %v563_v25, %v583_v34  ;;  %v897_v41 = vpop.f32.mrb[6].mxu0  ;;  %v613_v58 = vadd.f32 %v612_v48, %v611_v37 }
 0x13e   : > { %v558_v42 = vadd.f32 %v897_v41, %v333_v57  ;;  %v552_v43 = vpop.f32.mrb[7].mxu0  ;;  %v598_v49 = vmul.f32 %v594_v35, %v594_v35  ;;  %v645_v57 = vrot.slane %v644_v53, 2  ;;  %v631_v62 = vmul.f32 %v627_v36, %v627_v36  ;;  %p1028_p3 = por %p1027_p2, %p1026_p1 }
 0x13f   : > { %v597_v45 = vmul.f32 %v593_v39, %v593_v39  ;;  %v553_v46 = vadd.f32 %v552_v43, %v328_v55  ;;  %v630_v60 = vmul.f32 %v626_v40, %v626_v40  ;;  %v614_v55 = vrot.slane %v613_v58, 1 }
 0x140   : > { %v625_v47 = vsub.f32 %v558_v42, %v578_v13  ;;  %v646_v3 = vadd.f32 %v645_v57, %v644_v53  ;;  %p1029_p4 = pnand %p1028_p3, %p1022_p0 }
 0x141   : > { %v600_v50 = vadd.f32 %v599_v38, %v597_v45  ;;  %v624_v51 = vsub.f32 %v553_v46, %v573_v18  ;;  %v615_v6 = vadd.f32 %v614_v55, %v613_v58 }
 0x142   : > { %v629_v52 = vmul.f32 %v625_v47, %v625_v47  ;;  %v647_v9 = vrot.slane %v646_v3, 1 }
 0x143   : > { %v601_v54 = vadd.f32 %v600_v50, %v598_v49  ;;  %v628_v56 = vmul.f32 %v624_v51, %v624_v51  ;;  %v616_v12 = vmul.f32 0.01, %v615_v6 }
 0x144   : > { %v648_v15 = vadd.f32 %v647_v9, %v646_v3 }
 0x145   : > { %v602_v59 = vrot.slane %v601_v54, 4  ;;  %v632_v61 = vadd.f32 %v629_v52, %v628_v56 }
 0x146   : > { %v649_v19 = vmul.f32 0.01, %v648_v15 }
 0x147   : > { %v603_v63 = vadd.f32 %v602_v59, %v601_v54  ;;  %v633_v0 = vadd.f32 %v632_v61, %v630_v60 }
 0x149   : > { %v604_v1 = vrot.slane %v603_v63, 2  ;;  %v634_v2 = vadd.f32 %v633_v0, %v631_v62 }
 0x14b   : > { %v605_v4 = vadd.f32 %v604_v1, %v603_v63  ;;  %v635_v5 = vrot.slane %v634_v2, 4 }
 0x14d   : > { %v606_v7 = vrot.slane %v605_v4, 1  ;;  %v636_v8 = vadd.f32 %v635_v5, %v634_v2 }
 0x14f   : > { %v607_v10 = vadd.f32 %v606_v7, %v605_v4  ;;  %v637_v11 = vrot.slane %v636_v8, 2 }
 0x151   : > { %v608_v13 = vmul.f32 0.03125, %v607_v10  ;;  %v638_v14 = vadd.f32 %v637_v11, %v636_v8 }
 0x153   : > { %v617_v16 = vadd.f32 %v616_v12, %v608_v13  ;;  %v639_v17 = vrot.slane %v638_v14, 1 }
 0x155   : > { %v640_v18 = vadd.f32 %v639_v17, %v638_v14  ;;  %vm618_vm2 = vcmp.lt.f32.partialorder %v617_v16, inf  ;;  %v622_v25 = vmul.f32 %v621_v21, %v617_v16 }
 0x156   : > { %v620_v24 = vsel %vm618_vm2, %v617_v16, inf  ;;  %v619_v28 = vsel %vm618_vm2, 0, %v1116_v27 }
 0x157   : > { %v641_v20 = vmul.f32 0.03125, %v640_v18 }
 0x159   : > { %v650_v23 = vadd.f32 %v649_v19, %v641_v20 }
 0x15b   : > { %v654_v26 = vmul.f32 %v653_v22, %v650_v23  ;;  %vm651_vm3 = vcmp.lt.f32.partialorder %v650_v23, %v620_v24 }
 0x15c   : > { %v652_v29 = vsel %vm651_vm3, 1, %v619_v28 }
 0x15d   : > { %v655_v30 = vadd.f32 %v654_v26, %v622_v25  ;;  %657 = vst [vmem:[%s240_s13] sm:$0x1] %v652_v29 }
 0x15e   : > { %1032 = shalt.err (!%p1029_p4)
}
 0x15f   : > { %s1033_s30 = scalar_lea.hbm %s1407_s17, 16  ;;  %s1037_s16 = scalar_lea.hbm %s1487_s5, 32 }
 0x160   : > { %p1034_p7 = scmp.ne.s32.totalorder %s1407_s17, %s1033_s30  ;;  %p1038_p10 = scmp.lt.u32.totalorder %s1407_s17, %s1487_s5 }
 0x161   : > { %p1039_p11 = scmp.lt.u32.totalorder %s1037_s16, %s1033_s30  ;;  %p1041_p13 = scmp.lt.u32.totalorder %s1033_s30, %s1407_s17 }
 0x162   : > { %p1035_p8 = pnand %p1034_p7, %p1187_p5 }
 0x163   : > { %p1040_p12 = por %p1039_p11, %p1038_p10 }
 0x164   : > { %p1036_p9 = pneg %p1035_p8 }
 0x165   : > { %p1042_p0 = por %p1041_p13, %p1040_p12 }
 0x167   : > { %p1043_p1 = pnand %p1042_p0, %p1036_p9 }
 0x169   : > { %1046 = shalt.err (!%p1043_p1)
}
 0x16a   : > { %972 = dma.vmem_to_hbm [thread:$0]  (%p1187_p5), %s1409_s23, 16, %s1407_s17, %s663_s7   ;;  %656 = vst [vmem:[%s234_s22] sm:$0x1] %v655_v30 }
 0x16b   : > { %s659_s9 = scalar_lea.sflag [#allocation3], %s1394_s8  ;;  %s1047_s10 = scalar_lea.vmem %s1417_s14, 16 }
 0x16c   : > { %p1048_p2 = scmp.ne.s32.totalorder %s1417_s14, %s1047_s10  ;;  %s1118_s11 = smov [#allocation2]  }
 0x16d   : > { %s1051_s12 = sshll.u32 %s1118_s11, 4  ;;  %s1052_s12 = int_to_ptr.vmem [resolvable:$false] %s1051_s12 }
 0x16e   : > { %p1049_p3 = pnand %p1048_p2, %p1187_p5  ;;  %s1053_s30 = scalar_lea.vmem %s1052_s12, 32 }
 0x16f   : > { %p1054_p7 = scmp.lt.s32.totalorder %s1417_s14, %s1052_s12  ;;  %p1055_p8 = scmp.lt.s32.totalorder %s1053_s30, %s1047_s10 }
 0x170   : > { %p1050_p4 = pneg %p1049_p3 }
 0x171   : > { %p1056_p9 = por %p1055_p8, %p1054_p7 }
 0x173   : > { %p1057_p10 = pnand %p1056_p9, %p1050_p4 }
 0x175   : > { %1060 = shalt.err (!%p1057_p10)
}
 0x176   : > { %s1061_s8 = scalar_lea.hbm %s1415_s6, 16  ;;  %s1065_s17 = scalar_lea.hbm %s1486_s4, 32 }
 0x177   : > { %p1062_p11 = scmp.ne.s32.totalorder %s1415_s6, %s1061_s8  ;;  %p1066_p0 = scmp.lt.u32.totalorder %s1415_s6, %s1486_s4 }
 0x178   : > { %p1067_p1 = scmp.lt.u32.totalorder %s1065_s17, %s1061_s8  ;;  %p1069_p3 = scmp.lt.u32.totalorder %s1061_s8, %s1415_s6 }
 0x179   : > { %p1063_p12 = pnand %p1062_p11, %p1187_p5 }
 0x17a   : > { %p1068_p2 = por %p1067_p1, %p1066_p0 }
 0x17b   : > { %p1064_p13 = pneg %p1063_p12 }
 0x17c   : > { %p1070_p4 = por %p1069_p3, %p1068_p2 }
 0x17e   : > { %p1071_p7 = pnand %p1070_p4, %p1064_p13 }
 0x180   : > { %1074 = shalt.err (!%p1071_p7)
}
 0x181   : > { %971 = dma.vmem_to_hbm [thread:$0]  (%p1187_p5), %s1417_s14, 16, %s1415_s6, %s659_s9  }
 0x182 PF: > { %p982_p8 = scmp.ge.s32.totalorder %s1113_s21, 2  ;;  %s700_s15 = sand.u32 1, %s1101_s18  }
 0x183   : > { %s701_s16 = scalar_lea.sflag [#allocation3], %s700_s15 }
 0x184   : > { %p976_p9 = pnand %p982_p8, %p1191_p6 }
 0x186   : > { %1092 = dma.done.wait (!%p976_p9), %s701_s16, 16  }
 0x187   : > { %1094 = vsyncadd (!%p976_p9), %s701_s16, 4294967280  ;;  %s709_s25 = scalar_lea.sflag [#allocation5], %s700_s15 }
 0x188   : > { %1096 = dma.done.wait (!%p976_p9), %s709_s25, 16  }
 0x189   : > { %1098 = vsyncadd (!%p976_p9), %s709_s25, 4294967280  ;;  %p19_p5 = scmp.ge.s32.totalorder %s1174_s24, 4   ;;  %s1492_s18 = smov %s1105_s19 }
 0x18a   : > { %s1493_s19 = smov %s1109_s20  ;;  %s1494_s20 = smov %s1185_s27 }
 0x18b   : > { %s1495_s21 = smov %s1174_s24  ;;  %21 = sbr.rel (!%p19_p5) target bundleno = 5 (0x5), region = 91 }
 0x192   :  { %713 = vsyncpa [#allocation3], 1 }
 0x193   :  { %715 = vsyncpa [#allocation3 + $0x1], 1 }
 0x194   :  { %716 = vsyncpa [#allocation5], 1 }
 0x195   :  { %718 = vsyncpa [#allocation5 + $0x1], 1 }

</bundles_post_ra>
